<compile_context>
chip_gen: v5e
topology: v5e:2x2
jax: 0.10.0
libtpu: 0.0.40
codegen_flags: <defaults>
</compile_context>

<pallas_src>
import functools

import jax
import jax.numpy as jnp
from jax.experimental import pallas as pl
from jax.experimental.pallas import tpu as pltpu

EPS = 1e-5  # PyTorch InstanceNorm2d default


# ----------------------------- Pallas kernel ------------------------------ #
def _spade_cat_kernel(x_ref, patches_ref, w1_ref, b1_ref, wgb_ref, bgb_ref,
                      mask_ref, out_ref, *, spatial_w, norm_nc):
    # x_ref:       (1, C, HW)    feature map, NCHW flattened, f32
    # patches_ref: (1, K, HW)    im2col of concat(segmap, retrieval); K=pad(9*Cin)
    # w1_ref:      (NH, K)       mlp_shared conv weights (im2col layout)
    # b1_ref:      (NH, 1)
    # wgb_ref:     (9*2C, NH)    gamma+beta conv weights, 9 taps stacked on M
    # bgb_ref:     (2C, 1)
    # mask_ref:    (9, 1, HW)    per-tap zero-padding validity mask (0/1 f32)
    # out_ref:     (1, C, HW)
    C = norm_nc
    HW = x_ref.shape[-1]
    W = spatial_w

    # ---- param-free instance norm: per-channel over HW, one-pass stats ----
    xv = x_ref[0].astype(jnp.float32)                           # (C, HW)
    inv_n = 1.0 / HW
    mean = jnp.sum(xv, axis=1, keepdims=True) * inv_n
    ex2 = jnp.sum(xv * xv, axis=1, keepdims=True) * inv_n
    var = ex2 - mean * mean                                     # biased (torch)
    normalized = (xv - mean) * jax.lax.rsqrt(var + EPS)

    # ---- mlp_shared: 3x3 conv + ReLU as ONE im2col matmul ----
    actv = jnp.maximum(
        jnp.dot(w1_ref[...], patches_ref[0],
                preferred_element_type=jnp.float32) + b1_ref[...],
        0.0)                                                    # (NH, HW)

    # ---- mlp_gamma + mlp_beta: all 9 taps fused into ONE matmul ----
    # p_all[t*2C:(t+1)*2C] is the un-shifted per-position contribution of tap
    # t; shift it along the flat-spatial lane axis and mask the padding ring.
    p_all = jnp.dot(wgb_ref[...], actv,
                    preferred_element_type=jnp.float32)         # (9*2C, HW)
    acc = jnp.zeros((2 * C, HW), jnp.float32)
    for t in range(9):
        ky, kx = t // 3, t % 3
        s = (ky - 1) * W + (kx - 1)                             # flat shift
        p_t = p_all[t * 2 * C:(t + 1) * 2 * C, :]               # aligned slice
        if s != 0:
            # shifted[p] = p_t[(p + s) mod HW]; wrapped cols are masked below
            p_t = pltpu.roll(p_t, shift=(-s) % HW, axis=1)
        acc = acc + mask_ref[t] * p_t
    gb = acc + bgb_ref[...]                                     # (2C, HW)
    gamma = gb[:C, :]
    beta = gb[C:2 * C, :]

    out_ref[0] = (normalized * (1.0 + gamma) + beta).astype(out_ref.dtype)


# ------------------------------ glue (JAX) -------------------------------- #
def resize_nearest_nchw(img, out_h, out_w):
    # matches F.interpolate(mode='nearest'): src = floor(dst * in/out)
    _, _, in_h, in_w = img.shape
    rows = (jnp.arange(out_h) * in_h) // out_h
    cols = (jnp.arange(out_w) * in_w) // out_w
    return img[:, :, rows][:, :, :, cols]


def resize_bilinear_nchw(img, out_h, out_w):
    # matches F.interpolate(mode='bilinear', align_corners=False)
    _, _, in_h, in_w = img.shape

    def idx(out_size, in_size):
        scale = in_size / out_size
        src = jnp.maximum(
            (jnp.arange(out_size, dtype=jnp.float32) + 0.5) * scale - 0.5, 0.0)
        lo = jnp.minimum(jnp.floor(src).astype(jnp.int32), in_size - 1)
        hi = jnp.minimum(lo + 1, in_size - 1)
        frac = src - lo.astype(jnp.float32)
        return lo, hi, frac

    rl, rh, rf = idx(out_h, in_h)
    cl, ch, cf = idx(out_w, in_w)
    cf_ = cf[None, None, None, :]
    rf_ = rf[None, None, :, None]

    def hinterp(rows):
        return rows[:, :, :, cl] * (1.0 - cf_) + rows[:, :, :, ch] * cf_

    return hinterp(img[:, :, rl]) * (1.0 - rf_) + hinterp(img[:, :, rh]) * rf_


def make_params(key, norm_nc, label_nc, nhidden=128, ks=3):
    """Deterministic conv param init (PyTorch Conv2d-style uniform)."""
    cin = label_nc + 3

    def conv_init(k, out_c, in_c):
        fan_in = in_c * ks * ks
        bound = 1.0 / jnp.sqrt(jnp.float32(fan_in))
        kw, kb = jax.random.split(k)
        w = jax.random.uniform(kw, (out_c, in_c, ks, ks), jnp.float32,
                               -bound, bound)
        b = jax.random.uniform(kb, (out_c,), jnp.float32, -bound, bound)
        return w, b

    k1, k2, k3 = jax.random.split(key, 3)
    w1, b1 = conv_init(k1, nhidden, cin)
    wg, bg = conv_init(k2, norm_nc, nhidden)
    wb, bb = conv_init(k3, norm_nc, nhidden)
    return dict(w1=w1, b1=b1, wg=wg, bg=bg, wb=wb, bb=bb)


def spade_cat_forward(x, segmap, retrieval_image, weights):
    """x, segmap, retrieval_image are NCHW (PyTorch convention)."""
    N, C, H, W = x.shape
    HW = H * W
    NH = weights["b1"].shape[0]

    # -- resizes + concat (cheap glue in plain JAX) --
    ret_r = resize_bilinear_nchw(retrieval_image, H, W)
    seg_r = resize_nearest_nchw(segmap, H, W)
    inp = jnp.concatenate([seg_r, ret_r], axis=1)            # (N, Cin, H, W)
    cin = inp.shape[1]

    # -- im2col for conv1: (N, 9*Cin, H*W), K padded to a multiple of 8 --
    inp_pad = jnp.pad(inp, ((0, 0), (0, 0), (1, 1), (1, 1)))
    wins = [inp_pad[:, :, ky:ky + H, kx:kx + W]
            for ky in range(3) for kx in range(3)]           # 9 x (N,Cin,H,W)
    patches = jnp.stack(wins, axis=1).reshape(N, 9 * cin, HW)
    K = ((9 * cin + 7) // 8) * 8
    patches = jnp.pad(patches, ((0, 0), (0, K - 9 * cin), (0, 0)))

    # -- weights in matmul layout --
    w1 = jnp.transpose(weights["w1"], (0, 2, 3, 1)).reshape(NH, 9 * cin)
    w1 = jnp.pad(w1, ((0, 0), (0, K - 9 * cin)))             # (NH, K)
    b1 = weights["b1"].reshape(NH, 1)

    def per_tap(w):                                          # (C,NH,3,3)->(9,C,NH)
        return jnp.transpose(w, (2, 3, 0, 1)).reshape(9, C, NH)

    wgb = jnp.concatenate([per_tap(weights["wg"]), per_tap(weights["wb"])],
                          axis=1).reshape(9 * 2 * C, NH)     # (9*2C, NH)
    bgb = jnp.concatenate([weights["bg"], weights["bb"]]).reshape(2 * C, 1)

    # -- per-tap zero-padding validity masks over output positions --
    yy = jnp.arange(H)[:, None]
    xx = jnp.arange(W)[None, :]
    mrows = []
    for ky in range(3):
        for kx in range(3):
            valid = ((yy + ky - 1 >= 0) & (yy + ky - 1 < H) &
                     (xx + kx - 1 >= 0) & (xx + kx - 1 < W))
            mrows.append(valid.astype(jnp.float32).reshape(1, HW))
    masks = jnp.stack(mrows, axis=0)                         # (9, 1, HW)

    x_flat = x.reshape(N, C, HW).astype(jnp.float32)

    kernel = functools.partial(_spade_cat_kernel, spatial_w=W, norm_nc=C)

    out_flat = pl.pallas_call(
        kernel,
        out_shape=jax.ShapeDtypeStruct((N, C, HW), jnp.float32),
        grid_spec=pltpu.PrefetchScalarGridSpec(
            num_scalar_prefetch=0,
            grid=(N,),
            in_specs=[
                pl.BlockSpec((1, C, HW), lambda n: (n, 0, 0)),
                pl.BlockSpec((1, K, HW), lambda n: (n, 0, 0)),
                pl.BlockSpec((NH, K), lambda n: (0, 0)),
                pl.BlockSpec((NH, 1), lambda n: (0, 0)),
                pl.BlockSpec((9 * 2 * C, NH), lambda n: (0, 0)),
                pl.BlockSpec((2 * C, 1), lambda n: (0, 0)),
                pl.BlockSpec((9, 1, HW), lambda n: (0, 0, 0)),
            ],
            out_specs=pl.BlockSpec((1, C, HW), lambda n: (n, 0, 0)),
        ),
        compiler_params=pltpu.CompilerParams(
            dimension_semantics=("parallel",)),
    )(x_flat, patches, w1, b1, wgb, bgb, masks)

    return out_flat.reshape(N, C, H, W)                     # NCHW, no transpose


# ------------------------- pure-JAX reference ------------------------------ #
def ref_forward(x, segmap, retrieval_image, weights):
    _, C, H, W = x.shape
    ret_r = resize_bilinear_nchw(retrieval_image, H, W)
    seg_r = resize_nearest_nchw(segmap, H, W)
    inp = jnp.concatenate([seg_r, ret_r], axis=1)

    mean = x.mean(axis=(2, 3), keepdims=True)
    var = ((x - mean) ** 2).mean(axis=(2, 3), keepdims=True)
    normalized = (x - mean) / jnp.sqrt(var + EPS)

    def conv(v, w, b):
        o = jax.lax.conv_general_dilated(
            v, w, (1, 1), "SAME",
            dimension_numbers=("NCHW", "OIHW", "NCHW"))
        return o + b[None, :, None, None]

    actv = jax.nn.relu(conv(inp, weights["w1"], weights["b1"]))
    gamma = conv(actv, weights["wg"], weights["bg"])
    beta = conv(actv, weights["wb"], weights["bb"])
    return normalized * (1.0 + gamma) + beta


# --------------------------------- main ------------------------------------ #
if __name__ == "__main__":
    key = jax.random.PRNGKey(0)
    N, norm_nc, label_nc, H, W = 2, 4, 4, 16, 16
    kx, ks_, kr, kw = jax.random.split(key, 4)

    x = jax.random.normal(kx, (N, norm_nc, H, W), jnp.float32)
    segmap = jax.random.normal(ks_, (N, label_nc, 32, 32), jnp.float32)
    retrieval = jax.random.normal(kr, (N, 3, 8, 8), jnp.float32)
    weights = make_params(kw, norm_nc, label_nc)

    out = spade_cat_forward(x, segmap, retrieval, weights)
    jax.block_until_ready(out)

    ref = ref_forward(x, segmap, retrieval, weights)
    max_err = float(jnp.max(jnp.abs(out - ref)))
    assert jnp.allclose(out, ref, atol=1e-3, rtol=1e-3), f"max_err={max_err}"

    print("KERNEL_OK")
</pallas_src>

<mosaic_0001>
module attributes {stable_mosaic.version = 11 : i64} {
  func.func @_spade_cat_kernel(%arg0: i32, %arg1: memref<1x4x256xf32, #tpu.memory_space<vmem>>, %arg2: memref<1x64x256xf32, #tpu.memory_space<vmem>>, %arg3: memref<128x64xf32, #tpu.memory_space<vmem>>, %arg4: memref<128x1xf32, #tpu.memory_space<vmem>>, %arg5: memref<72x128xf32, #tpu.memory_space<vmem>>, %arg6: memref<8x1xf32, #tpu.memory_space<vmem>>, %arg7: memref<9x1x256xf32, #tpu.memory_space<vmem>>, %arg8: memref<1x4x256xf32, #tpu.memory_space<vmem>>) attributes {dimension_semantics = [#tpu.dimension_semantics<parallel>], iteration_bounds = array<i64: 2>, scalar_prefetch = 0 : i64, scratch_operands = 0 : i64, tpu.core_type = #tpu.core_type<tc>, window_params = [{transform_indices = @transform_0, window_bounds = array<i64: 1, 4, 256>}, {transform_indices = @transform_1, window_bounds = array<i64: 1, 64, 256>}, {pipeline_mode = #tpu.pipeline_mode<synchronous>, transform_indices = @transform_2, window_bounds = array<i64: 128, 64>}, {pipeline_mode = #tpu.pipeline_mode<synchronous>, transform_indices = @transform_3, window_bounds = array<i64: 128, 1>}, {pipeline_mode = #tpu.pipeline_mode<synchronous>, transform_indices = @transform_4, window_bounds = array<i64: 72, 128>}, {pipeline_mode = #tpu.pipeline_mode<synchronous>, transform_indices = @transform_5, window_bounds = array<i64: 8, 1>}, {pipeline_mode = #tpu.pipeline_mode<synchronous>, transform_indices = @transform_6, window_bounds = array<i64: 9, 1, 256>}, {transform_indices = @transform_7, window_bounds = array<i64: 1, 4, 256>}]} {
    %c0 = arith.constant 0 : index
    %c0_0 = arith.constant 0 : index
    %c0_1 = arith.constant 0 : index
    %0 = vector.load %arg1[%c0, %c0_0, %c0_1] : memref<1x4x256xf32, #tpu.memory_space<vmem>>, vector<1x4x256xf32>
    %1 = vector.shape_cast %0 : vector<1x4x256xf32> to vector<4x256xf32>
    %cst = arith.constant dense<0.000000e+00> : vector<4xf32>
    %2 = vector.multi_reduction <add>, %1, %cst [1] : vector<4x256xf32> to vector<4xf32>
    %3 = vector.shape_cast %2 : vector<4xf32> to vector<4x1xf32>
    %cst_2 = arith.constant 3.906250e-03 : f32
    %4 = vector.broadcast %cst_2 : f32 to vector<4x1xf32>
    %5 = arith.mulf %3, %4 : vector<4x1xf32>
    %6 = arith.mulf %1, %1 : vector<4x256xf32>
    %cst_3 = arith.constant dense<0.000000e+00> : vector<4xf32>
    %7 = vector.multi_reduction <add>, %6, %cst_3 [1] : vector<4x256xf32> to vector<4xf32>
    %8 = vector.shape_cast %7 : vector<4xf32> to vector<4x1xf32>
    %cst_4 = arith.constant 3.906250e-03 : f32
    %9 = vector.broadcast %cst_4 : f32 to vector<4x1xf32>
    %10 = arith.mulf %8, %9 : vector<4x1xf32>
    %11 = arith.mulf %5, %5 : vector<4x1xf32>
    %12 = arith.subf %10, %11 : vector<4x1xf32>
    %13 = vector.broadcast %5 : vector<4x1xf32> to vector<4x256xf32>
    %14 = arith.subf %1, %13 : vector<4x256xf32>
    %cst_5 = arith.constant 9.99999974E-6 : f32
    %15 = vector.broadcast %cst_5 : f32 to vector<4x1xf32>
    %16 = arith.addf %12, %15 : vector<4x1xf32>
    %17 = math.rsqrt %16 : vector<4x1xf32>
    %18 = vector.broadcast %17 : vector<4x1xf32> to vector<4x256xf32>
    %19 = arith.mulf %14, %18 : vector<4x256xf32>
    %c0_6 = arith.constant 0 : index
    %c0_7 = arith.constant 0 : index
    %20 = vector.load %arg3[%c0_6, %c0_7] : memref<128x64xf32, #tpu.memory_space<vmem>>, vector<128x64xf32>
    %c0_8 = arith.constant 0 : index
    %c0_9 = arith.constant 0 : index
    %c0_10 = arith.constant 0 : index
    %21 = vector.load %arg2[%c0_8, %c0_9, %c0_10] : memref<1x64x256xf32, #tpu.memory_space<vmem>>, vector<1x64x256xf32>
    %22 = vector.shape_cast %21 : vector<1x64x256xf32> to vector<64x256xf32>
    %cst_11 = arith.constant dense<0.000000e+00> : vector<128x256xf32>
    %23 = tpu.matmul %20, %22, %cst_11 {dimension_numbers = #tpu.dot_dimension_numbers<[1], [0], [0], [1], [0, 0, 1, 1], [], []>} : vector<128x64xf32>, vector<64x256xf32>, vector<128x256xf32> -> vector<128x256xf32>
    %c0_12 = arith.constant 0 : index
    %c0_13 = arith.constant 0 : index
    %24 = vector.load %arg4[%c0_12, %c0_13] : memref<128x1xf32, #tpu.memory_space<vmem>>, vector<128x1xf32>
    %25 = vector.broadcast %24 : vector<128x1xf32> to vector<128x256xf32>
    %26 = arith.addf %23, %25 : vector<128x256xf32>
    %cst_14 = arith.constant 0.000000e+00 : f32
    %27 = vector.broadcast %cst_14 : f32 to vector<128x256xf32>
    %28 = arith.maximumf %26, %27 : vector<128x256xf32>
    %c0_15 = arith.constant 0 : index
    %c0_16 = arith.constant 0 : index
    %29 = vector.load %arg5[%c0_15, %c0_16] : memref<72x128xf32, #tpu.memory_space<vmem>>, vector<72x128xf32>
    %cst_17 = arith.constant dense<0.000000e+00> : vector<72x256xf32>
    %30 = tpu.matmul %29, %28, %cst_17 {dimension_numbers = #tpu.dot_dimension_numbers<[1], [0], [0], [1], [0, 0, 1, 1], [], []>} : vector<72x128xf32>, vector<128x256xf32>, vector<72x256xf32> -> vector<72x256xf32>
    %cst_18 = arith.constant 0.000000e+00 : f32
    %31 = vector.broadcast %cst_18 : f32 to vector<8x256xf32>
    %32 = vector.extract_strided_slice %30 {offsets = [0, 0], sizes = [8, 256], strides = [1, 1]} : vector<72x256xf32> to vector<8x256xf32>
    %c17_i32 = arith.constant 17 : i32
    %33 = tpu.dynamic_rotate %32 by %c17_i32 dim 1 : vector<8x256xf32>, i32 -> vector<8x256xf32>
    %c0_19 = arith.constant 0 : index
    %c0_20 = arith.constant 0 : index
    %c0_21 = arith.constant 0 : index
    %34 = vector.load %arg7[%c0_19, %c0_20, %c0_21] : memref<9x1x256xf32, #tpu.memory_space<vmem>>, vector<1x1x256xf32>
    %35 = vector.shape_cast %34 : vector<1x1x256xf32> to vector<1x256xf32>
    %36 = vector.broadcast %35 : vector<1x256xf32> to vector<8x256xf32>
    %37 = arith.mulf %36, %33 : vector<8x256xf32>
    %38 = arith.addf %31, %37 : vector<8x256xf32>
    %39 = vector.extract_strided_slice %30 {offsets = [8, 0], sizes = [8, 256], strides = [1, 1]} : vector<72x256xf32> to vector<8x256xf32>
    %c16_i32 = arith.constant 16 : i32
    %40 = tpu.dynamic_rotate %39 by %c16_i32 dim 1 : vector<8x256xf32>, i32 -> vector<8x256xf32>
    %c1 = arith.constant 1 : index
    %c0_22 = arith.constant 0 : index
    %c0_23 = arith.constant 0 : index
    %41 = vector.load %arg7[%c1, %c0_22, %c0_23] : memref<9x1x256xf32, #tpu.memory_space<vmem>>, vector<1x1x256xf32>
    %42 = vector.shape_cast %41 : vector<1x1x256xf32> to vector<1x256xf32>
    %43 = vector.broadcast %42 : vector<1x256xf32> to vector<8x256xf32>
    %44 = arith.mulf %43, %40 : vector<8x256xf32>
    %45 = arith.addf %38, %44 : vector<8x256xf32>
    %46 = vector.extract_strided_slice %30 {offsets = [16, 0], sizes = [8, 256], strides = [1, 1]} : vector<72x256xf32> to vector<8x256xf32>
    %c15_i32 = arith.constant 15 : i32
    %47 = tpu.dynamic_rotate %46 by %c15_i32 dim 1 : vector<8x256xf32>, i32 -> vector<8x256xf32>
    %c2 = arith.constant 2 : index
    %c0_24 = arith.constant 0 : index
    %c0_25 = arith.constant 0 : index
    %48 = vector.load %arg7[%c2, %c0_24, %c0_25] : memref<9x1x256xf32, #tpu.memory_space<vmem>>, vector<1x1x256xf32>
    %49 = vector.shape_cast %48 : vector<1x1x256xf32> to vector<1x256xf32>
    %50 = vector.broadcast %49 : vector<1x256xf32> to vector<8x256xf32>
    %51 = arith.mulf %50, %47 : vector<8x256xf32>
    %52 = arith.addf %45, %51 : vector<8x256xf32>
    %53 = vector.extract_strided_slice %30 {offsets = [24, 0], sizes = [8, 256], strides = [1, 1]} : vector<72x256xf32> to vector<8x256xf32>
    %c1_i32 = arith.constant 1 : i32
    %54 = tpu.dynamic_rotate %53 by %c1_i32 dim 1 : vector<8x256xf32>, i32 -> vector<8x256xf32>
    %c3 = arith.constant 3 : index
    %c0_26 = arith.constant 0 : index
    %c0_27 = arith.constant 0 : index
    %55 = vector.load %arg7[%c3, %c0_26, %c0_27] : memref<9x1x256xf32, #tpu.memory_space<vmem>>, vector<1x1x256xf32>
    %56 = vector.shape_cast %55 : vector<1x1x256xf32> to vector<1x256xf32>
    %57 = vector.broadcast %56 : vector<1x256xf32> to vector<8x256xf32>
    %58 = arith.mulf %57, %54 : vector<8x256xf32>
    %59 = arith.addf %52, %58 : vector<8x256xf32>
    %60 = vector.extract_strided_slice %30 {offsets = [32, 0], sizes = [8, 256], strides = [1, 1]} : vector<72x256xf32> to vector<8x256xf32>
    %c4 = arith.constant 4 : index
    %c0_28 = arith.constant 0 : index
    %c0_29 = arith.constant 0 : index
    %61 = vector.load %arg7[%c4, %c0_28, %c0_29] : memref<9x1x256xf32, #tpu.memory_space<vmem>>, vector<1x1x256xf32>
    %62 = vector.shape_cast %61 : vector<1x1x256xf32> to vector<1x256xf32>
    %63 = vector.broadcast %62 : vector<1x256xf32> to vector<8x256xf32>
    %64 = arith.mulf %63, %60 : vector<8x256xf32>
    %65 = arith.addf %59, %64 : vector<8x256xf32>
    %66 = vector.extract_strided_slice %30 {offsets = [40, 0], sizes = [8, 256], strides = [1, 1]} : vector<72x256xf32> to vector<8x256xf32>
    %c255_i32 = arith.constant 255 : i32
    %67 = tpu.dynamic_rotate %66 by %c255_i32 dim 1 : vector<8x256xf32>, i32 -> vector<8x256xf32>
    %c5 = arith.constant 5 : index
    %c0_30 = arith.constant 0 : index
    %c0_31 = arith.constant 0 : index
    %68 = vector.load %arg7[%c5, %c0_30, %c0_31] : memref<9x1x256xf32, #tpu.memory_space<vmem>>, vector<1x1x256xf32>
    %69 = vector.shape_cast %68 : vector<1x1x256xf32> to vector<1x256xf32>
    %70 = vector.broadcast %69 : vector<1x256xf32> to vector<8x256xf32>
    %71 = arith.mulf %70, %67 : vector<8x256xf32>
    %72 = arith.addf %65, %71 : vector<8x256xf32>
    %73 = vector.extract_strided_slice %30 {offsets = [48, 0], sizes = [8, 256], strides = [1, 1]} : vector<72x256xf32> to vector<8x256xf32>
    %c241_i32 = arith.constant 241 : i32
    %74 = tpu.dynamic_rotate %73 by %c241_i32 dim 1 : vector<8x256xf32>, i32 -> vector<8x256xf32>
    %c6 = arith.constant 6 : index
    %c0_32 = arith.constant 0 : index
    %c0_33 = arith.constant 0 : index
    %75 = vector.load %arg7[%c6, %c0_32, %c0_33] : memref<9x1x256xf32, #tpu.memory_space<vmem>>, vector<1x1x256xf32>
    %76 = vector.shape_cast %75 : vector<1x1x256xf32> to vector<1x256xf32>
    %77 = vector.broadcast %76 : vector<1x256xf32> to vector<8x256xf32>
    %78 = arith.mulf %77, %74 : vector<8x256xf32>
    %79 = arith.addf %72, %78 : vector<8x256xf32>
    %80 = vector.extract_strided_slice %30 {offsets = [56, 0], sizes = [8, 256], strides = [1, 1]} : vector<72x256xf32> to vector<8x256xf32>
    %c240_i32 = arith.constant 240 : i32
    %81 = tpu.dynamic_rotate %80 by %c240_i32 dim 1 : vector<8x256xf32>, i32 -> vector<8x256xf32>
    %c7 = arith.constant 7 : index
    %c0_34 = arith.constant 0 : index
    %c0_35 = arith.constant 0 : index
    %82 = vector.load %arg7[%c7, %c0_34, %c0_35] : memref<9x1x256xf32, #tpu.memory_space<vmem>>, vector<1x1x256xf32>
    %83 = vector.shape_cast %82 : vector<1x1x256xf32> to vector<1x256xf32>
    %84 = vector.broadcast %83 : vector<1x256xf32> to vector<8x256xf32>
    %85 = arith.mulf %84, %81 : vector<8x256xf32>
    %86 = arith.addf %79, %85 : vector<8x256xf32>
    %87 = vector.extract_strided_slice %30 {offsets = [64, 0], sizes = [8, 256], strides = [1, 1]} : vector<72x256xf32> to vector<8x256xf32>
    %c239_i32 = arith.constant 239 : i32
    %88 = tpu.dynamic_rotate %87 by %c239_i32 dim 1 : vector<8x256xf32>, i32 -> vector<8x256xf32>
    %c8 = arith.constant 8 : index
    %c0_36 = arith.constant 0 : index
    %c0_37 = arith.constant 0 : index
    %89 = vector.load %arg7[%c8, %c0_36, %c0_37] : memref<9x1x256xf32, #tpu.memory_space<vmem>>, vector<1x1x256xf32>
    %90 = vector.shape_cast %89 : vector<1x1x256xf32> to vector<1x256xf32>
    %91 = vector.broadcast %90 : vector<1x256xf32> to vector<8x256xf32>
    %92 = arith.mulf %91, %88 : vector<8x256xf32>
    %93 = arith.addf %86, %92 : vector<8x256xf32>
    %c0_38 = arith.constant 0 : index
    %c0_39 = arith.constant 0 : index
    %94 = vector.load %arg6[%c0_38, %c0_39] : memref<8x1xf32, #tpu.memory_space<vmem>>, vector<8x1xf32>
    %95 = vector.broadcast %94 : vector<8x1xf32> to vector<8x256xf32>
    %96 = arith.addf %93, %95 : vector<8x256xf32>
    %97 = vector.extract_strided_slice %96 {offsets = [0, 0], sizes = [4, 256], strides = [1, 1]} : vector<8x256xf32> to vector<4x256xf32>
    %98 = vector.extract_strided_slice %96 {offsets = [4, 0], sizes = [4, 256], strides = [1, 1]} : vector<8x256xf32> to vector<4x256xf32>
    %cst_40 = arith.constant 1.000000e+00 : f32
    %99 = vector.broadcast %cst_40 : f32 to vector<4x256xf32>
    %100 = arith.addf %99, %97 : vector<4x256xf32>
    %101 = arith.mulf %19, %100 : vector<4x256xf32>
    %102 = arith.addf %101, %98 : vector<4x256xf32>
    %c0_41 = arith.constant 0 : index
    %c0_42 = arith.constant 0 : index
    %c0_43 = arith.constant 0 : index
    %103 = vector.load %arg8[%c0_41, %c0_42, %c0_43] : memref<1x4x256xf32, #tpu.memory_space<vmem>>, vector<1x4x256xf32>
    %104 = vector.shape_cast %103 : vector<1x4x256xf32> to vector<4x256xf32>
    %105 = vector.shape_cast %102 : vector<4x256xf32> to vector<1x4x256xf32>
    tpu.vector_store %arg8[%c0_41, %c0_42, %c0_43], %105 {strides = array<i32>} : memref<1x4x256xf32, #tpu.memory_space<vmem>>, vector<1x4x256xf32>,
    return
  }
  func.func @transform_0(%arg0: i32) -> (i32, i32, i32) {
    %c0_i32 = arith.constant 0 : i32
    %c0_i32_0 = arith.constant 0 : i32
    %c0_i32_1 = arith.constant 0 : i32
    return %arg0, %c0_i32, %c0_i32_0 : i32, i32, i32
  }
  func.func @transform_1(%arg0: i32) -> (i32, i32, i32) {
    %c0_i32 = arith.constant 0 : i32
    %c0_i32_0 = arith.constant 0 : i32
    %c0_i32_1 = arith.constant 0 : i32
    return %arg0, %c0_i32, %c0_i32_0 : i32, i32, i32
  }
  func.func @transform_2(%arg0: i32) -> (i32, i32) {
    %c0_i32 = arith.constant 0 : i32
    %c0_i32_0 = arith.constant 0 : i32
    %c0_i32_1 = arith.constant 0 : i32
    return %c0_i32, %c0_i32_0 : i32, i32
  }
  func.func @transform_3(%arg0: i32) -> (i32, i32) {
    %c0_i32 = arith.constant 0 : i32
    %c0_i32_0 = arith.constant 0 : i32
    %c0_i32_1 = arith.constant 0 : i32
    return %c0_i32, %c0_i32_0 : i32, i32
  }
  func.func @transform_4(%arg0: i32) -> (i32, i32) {
    %c0_i32 = arith.constant 0 : i32
    %c0_i32_0 = arith.constant 0 : i32
    %c0_i32_1 = arith.constant 0 : i32
    return %c0_i32, %c0_i32_0 : i32, i32
  }
  func.func @transform_5(%arg0: i32) -> (i32, i32) {
    %c0_i32 = arith.constant 0 : i32
    %c0_i32_0 = arith.constant 0 : i32
    %c0_i32_1 = arith.constant 0 : i32
    return %c0_i32, %c0_i32_0 : i32, i32
  }
  func.func @transform_6(%arg0: i32) -> (i32, i32, i32) {
    %c0_i32 = arith.constant 0 : i32
    %c0_i32_0 = arith.constant 0 : i32
    %c0_i32_1 = arith.constant 0 : i32
    %c0_i32_2 = arith.constant 0 : i32
    return %c0_i32, %c0_i32_0, %c0_i32_1 : i32, i32, i32
  }
  func.func @transform_7(%arg0: i32) -> (i32, i32, i32) {
    %c0_i32 = arith.constant 0 : i32
    %c0_i32_0 = arith.constant 0 : i32
    %c0_i32_1 = arith.constant 0 : i32
    return %arg0, %c0_i32, %c0_i32_0 : i32, i32, i32
  }
}

</mosaic_0001>

<bundles_post_ra>
// kernel: tpu_custom_call.1
= control target key start
LH: loop header
LB: loop body
LE: loop exit
PB: predicated region body
PF: predicated region fallthrough
CT: control target
= control target key end

     0   :  { %s1848_s0 = inlined_call_operand.hbm [shape: f32[2,4,256], index: 0, kind: input, shape index: {}]   ;;  %s1849_s1 = inlined_call_operand.vmem [shape: f32[2,64,256], index: 1, kind: input, shape index: {}]   ;;  %s1850_s2 = inlined_call_operand.vmem [shape: f32[128,64], index: 2, kind: input, shape index: {}]   ;;  %s1851_s3 = inlined_call_operand.vmem [shape: f32[128,1], index: 3, kind: input, shape index: {}]   ;;  %s1852_s4 = inlined_call_operand.vmem [shape: f32[72,128], index: 4, kind: input, shape index: {}]   ;;  %s1853_s5 = inlined_call_operand.vmem [shape: f32[8,1], index: 5, kind: input, shape index: {}]   ;;  %s1854_s6 = inlined_call_operand.hbm [shape: f32[9,1,256], index: 6, kind: input, shape index: {}]   ;;  %s1855_s7 = inlined_call_operand.hbm [shape: f32[2,4,256], index: 7, kind: output, shape index: {}]  }
   0x1   :  { %1856 = sst [smem:[#allocation11_spill]] %s1854_s6 }
   0x2   :  { %12 = vsyncpa [#allocation3], 0 }
   0x3   :  { %14 = vsyncpa [#allocation3 + $0x1], 0 }
   0x4   :  { %15 = vsyncpa [#allocation6], 0 }
   0x5   :  { %16 = vsyncpa [#allocation4], 0 }
   0x6   :  { %18 = vsyncpa [#allocation4 + $0x1], 0  ;;  %s1426_s24 = smov 0   ;;  %s1428_s25 = smov 0  }
   0x7   :  { %s1430_s26 = smov 0   ;;  %s1432_s27 = smov 0  }
   0x8 LB: > { %s1857_s6 = sld [smem:[#allocation11_spill]]  ;;  %s1450_s8 = sadd.s32 4294967295, %s1371_s27   ;;  %s1371_s27 = sphi %s1432_s27, %s1867_s27   ;;  %s1367_s26 = sphi %s1430_s26, %s1866_s26   ;;  %s1363_s25 = sphi %s1428_s25, %s1865_s25   ;;  %s1359_s24 = sphi %s1426_s24, %s1864_s24  }
   0x9   : > { %p1115_p0 = scmp.ge.s32.totalorder %s1371_s27, 1  ;;  %p45_p1 = scmp.eq.s32.totalorder %s1450_s8, 0 }
   0xa   : > { %p212_p2 = scmp.lt.s32.totalorder %s1371_s27, 3  ;;  %s1373_s10 = smov [#allocation5]  }
   0xb   : > { %s237_s11 = sshll.u32 %s1373_s10, 4  ;;  %s1374_s12 = smov 32   ;;  %s238_s11 = int_to_ptr.vmem [resolvable:$true] %s237_s11 }
   0xc   : > { %p1455_p3 = pnand %p1115_p0, %p212_p2  ;;  %s1375_s13 = smov 2  }
   0xd   : > { %s1114_s14 = sadd.s32 4294967294, %s1371_s27   ;;  %s1466_s15 = sadd.s32 1, %s1371_s27  }
   0xe   : > { %s235_s30 = sshll.u32 %s1857_s6, 4  ;;  %p1175_p4 = pneg %p1455_p3  ;;  %s236_s30 = int_to_ptr.hbm [resolvable:$true] %s235_s30 }
   0xf   : > { %s31_s16 = sadd.s32 1, %s1367_s26  ;;  %s28_s17 = ssub.s32 %s1371_s27, %s1466_s15 }
  0x10   : > { %p1176_p6 = pnand %p1175_p4, %p45_p1  ;;  %p38_p7 = scmp.ne.s32.totalorder %s1367_s26, %s1363_s25 }
  0x11   : > { %p29_p8 = scmp.eq.s32.totalorder %s28_s17, 0  ;;  %p39_p9 = scmp.eq.s32.totalorder %s1371_s27, 0 }
  0x12   : > { %1178 = dma.hbm_to_vmem [thread:$0]  (!%p1176_p6), %s236_s30, 288, %s238_s11, [#allocation6], %s1374_s12, %s1374_s12, %s1375_s13  }
  0x13   : > { %p44_p10 = scmp.ne.s32.totalorder %s1363_s25, %s1359_s24  ;;  %p199_p11 = scmp.eq.s32.totalorder %s1450_s8, 1 }
  0x14   : > { %s1478_s18 = scalar_select %p29_p8, %s1367_s26, %s31_s16  }
  0x15   : > { %p1482_p12 = por %p45_p1, %p44_p10  ;;  %p1486_p13 = por %p199_p11, %p38_p7 }
  0x16   : > { %p205_p0 = scmp.eq.s32.totalorder %s1114_s14, 1  ;;  %p40_p2 = por %p39_p9, %p38_p7 }
  0x17   : > { %s251_s21 = sand.u32 1, %s1367_s26   ;;  %p1188_p6 = scmp.lt.s32.totalorder %s1371_s27, 2 }
  0x18   : > { %p1491_p4 = por %p205_p0, %p44_p10  ;;  %s1118_s23 = sshll.u32 %s251_s21, 3 }
  0x19   : > { %s1164_s28 = sshll.u32 %s1371_s27, 3  ;;  %s255_s12 = scalar_lea.vmem [#allocation2], %s1118_s23 }
  0x1a   : > { %s260_s10 = scalar_lea.hbm %s1848_s0, %s1164_s28  ;;  %s264_s13 = sshll.u32 %s255_s12, 4  ;;  %s265_s13 = int_to_ptr.vmem [resolvable:$true] %s264_s13 }
  0x1b   : > { %s262_s11 = sshll.u32 %s260_s10, 4  ;;  %p1500_p8 = pnand %p1188_p6, %p40_p2  ;;  %s263_s11 = int_to_ptr.hbm [resolvable:$true] %s262_s11 }
  0x1c   : > { %s252_s16 = scalar_lea.sflag [#allocation3], %s251_s21  ;;  %s1271_s17 = sshra.s32 %s263_s11, 4  ;;  %s1272_s17 = int_to_ptr.hbm [resolvable:$true] %s1271_s17 }
  0x1d   : > { %s1273_s6 = scalar_lea.hbm %s1272_s17, 8  ;;  %p1275_p9 = pneg %p1500_p8 }
  0x1e   : > { %p1274_p7 = scmp.ne.s32.totalorder %s1272_s17, %s1273_s6  ;;  %s1278_s23 = scalar_lea.hbm %s1848_s0, 16 }
  0x1f   : > { %p1279_p0 = scmp.lt.s32.totalorder %s1272_s17, %s1848_s0  ;;  %p1280_p2 = scmp.lt.s32.totalorder %s1278_s23, %s1273_s6 }
  0x20   : > { %p1276_p10 = pnand %p1275_p9, %p1274_p7 }
  0x21   : > { %p1281_p6 = por %p1280_p2, %p1279_p0 }
  0x22   : > { %p1277_p11 = pneg %p1276_p10 }
  0x24   : > { %p1282_p5 = pnand %p1281_p6, %p1277_p11 }
  0x26   : > { %1285 = shalt.err (!%p1282_p5)
}
  0x27   : > { %1182 = dma.hbm_to_vmem [thread:$0]  (!%p1500_p8), %s263_s11, 128, %s265_s13, %s252_s16  }
  0x28   : > { %281 = sbr.rel (%p1455_p3) target bundleno = 691 (0x2b3), region = 48  ;;  %s1517_s21 = sand.u32 (!%p1455_p3), 1, %s1363_s25  }
  0x29   : > { %s1122_s12 = sshll.u32 (!%p1455_p3), %s1517_s21, 3  ;;  %s284_s28 = scalar_lea.sflag (!%p1455_p3), [#allocation3], %s1517_s21 }
  0x2a   : > { %s1523_s6 = scalar_lea.vmem (!%p1455_p3), [#allocation2], %s1122_s12 }
  0x2d   : > { %1346 = dma.done.wait (%p1482_p12), %s284_s28, 128  }
  0x2e   : > { %1348 = vsyncadd (%p1482_p12), %s284_s28, 4294967168 }
  0x2f   : > { %1350 = dma.done.wait (%p45_p1), [#allocation6], 288  }
  0x30   : > { %1352 = vsyncadd (%p45_p1), [#allocation6], 4294967008  ;;  %p329_p3 = scmp.lt.s32.totalorder %s1450_s8, 1  ;;  %v1376_v0 = vmov 0   ;;  %v435_v1 = vld [vmem:[%s1851_s3 + $0x78] sm:$0xff]  ;;  %v433_v9 = vld [vmem:[%s1851_s3 + $0x68] sm:$0xff] }
  0x31   : > { %1236 = vset.pattern.permute.xlu0 %v1376_v0  ;;  %1237 = vset.pattern.permute.xlu1 %v1376_v0  ;;  %v434_v11 = vld [vmem:[%s1851_s3 + $0x70] sm:$0xff]  ;;  %v431_v15 = vld [vmem:[%s1851_s3 + $0x58] sm:$0xff]  ;;  %v432_v18 = vld [vmem:[%s1851_s3 + $0x60] sm:$0xff]  ;;  %vm516_vm0 = vcmask 523264   ;;  %vm341_vm1 = vcmask 1043456   ;;  %s1377_s13 = smov 17  }
  0x32   : > { %s330_s9 = scalar_select %p329_p3, %s1450_s8, 1  ;;  %1238 = vset.pattern.permute.xlu2 %v1376_v0  ;;  %513 = vperm.xlu0 %1236, %v435_v1   ;;  %v388_v22 = vld [vmem:[%s1850_s2] sm:$0xff]  ;;  %v429_v23 = vld [vmem:[%s1851_s3 + $0x48] sm:$0xff]  ;;  %v430_v24 = vld [vmem:[%s1851_s3 + $0x50] sm:$0xff] }
  0x33   : > { %503 = vperm.xlu1 %1237, %v433_v9   ;;  %493 = vperm.xlu2 %1238, %v431_v15   ;;  %v428_v25 = vld [vmem:[%s1851_s3 + $0x40] sm:$0xff]  ;;  %v389_v26 = vld [vmem:[%s1850_s2 + $0x8] sm:$0xff]  ;;  %v426_v27 = vld [vmem:[%s1851_s3 + $0x30] sm:$0xff]  ;;  %s1378_s14 = smov 16   ;;  %s1379_s16 = smov 15  }
  0x34   : > { %s1165_s11 = sshll.u32 %s330_s9, 7  ;;  %v427_v28 = vld [vmem:[%s1851_s3 + $0x38] sm:$0xff]  ;;  %v425_v29 = vld [vmem:[%s1851_s3 + $0x28] sm:$0xff]  ;;  %v390_v30 = vld [vmem:[%s1850_s2 + $0x10] sm:$0xff]  ;;  %s1380_s17 = smov 1  }
  0x35   : > { %s1538_s19 = scalar_lea.vmem %s1849_s1, %s1165_s11  ;;  %v423_v31 = vld [vmem:[%s1851_s3 + $0x18] sm:$0xff]  ;;  %v424_v32 = vld [vmem:[%s1851_s3 + $0x20] sm:$0xff]  ;;  %v422_v33 = vld [vmem:[%s1851_s3 + $0x10] sm:$0xff]  ;;  %s1381_s29 = smov 127  }
  0x36   : > { %v418_v2 = vld [vmem:[%s1538_s19 + $0x70] sm:$0xff]  ;;  %v419_v3 = vld [vmem:[%s1538_s19 + $0x78] sm:$0xff]  ;;  %v416_v4 = vld [vmem:[%s1538_s19 + $0x60] sm:$0xff]  ;;  %s1382_s23 = smov 113   ;;  %s1383_s30 = smov 112  }
  0x37   : > { %573 = vmatpush.msra.mxu0 %v418_v2  ;;  %v417_v5 = vld [vmem:[%s1538_s19 + $0x68] sm:$0xff]  ;;  %638 = vmatpush.msra.mxu1 %v419_v3  ;;  %v414_v6 = vld [vmem:[%s1538_s19 + $0x50] sm:$0xff]  ;;  %v415_v7 = vld [vmem:[%s1538_s19 + $0x58] sm:$0xff]  ;;  %s1166_s28 = sshll.u32 %s1450_s8, 3  ;;  %s1006_s8 = scalar_lea.sflag [#allocation4], %s1517_s21 }
  0x38   : > { %v412_v8 = vld [vmem:[%s1538_s19 + $0x40] sm:$0xff]  ;;  %v413_v10 = vld [vmem:[%s1538_s19 + $0x48] sm:$0xff]  ;;  %v410_v12 = vld [vmem:[%s1538_s19 + $0x30] sm:$0xff]  ;;  %s1321_s10 = scalar_lea.hbm %s1855_s7, 16 }
  0x39   : > { %574 = vmatpush.msra.mxu0 %v416_v4  ;;  %639 = vmatpush.msra.mxu1 %v417_v5  ;;  %v411_v13 = vld [vmem:[%s1538_s19 + $0x38] sm:$0xff]  ;;  %v408_v14 = vld [vmem:[%s1538_s19 + $0x20] sm:$0xff]  ;;  %v409_v16 = vld [vmem:[%s1538_s19 + $0x28] sm:$0xff] }
  0x3a   : > { %508 = vperm.xlu0 %1236, %v434_v11   ;;  %v406_v17 = vld [vmem:[%s1538_s19 + $0x10] sm:$0xff]  ;;  %v407_v19 = vld [vmem:[%s1538_s19 + $0x18] sm:$0xff]  ;;  %v404_v20 = vld [vmem:[%s1538_s19] sm:$0xff] }
  0x3b   : > { %575 = vmatpush.msra.mxu0 %v414_v6  ;;  %640 = vmatpush.msra.mxu1 %v415_v7  ;;  %v405_v21 = vld [vmem:[%s1538_s19 + $0x8] sm:$0xff]  ;;  %v391_v34 = vld [vmem:[%s1850_s2 + $0x18] sm:$0xff]  ;;  %v420_v35 = vld [vmem:[%s1851_s3] sm:$0xff] }
  0x3c   : > { %498 = vperm.xlu1 %1237, %v432_v18   ;;  %488 = vperm.xlu2 %1238, %v430_v24   ;;  %v421_v36 = vld [vmem:[%s1851_s3 + $0x8] sm:$0xff]  ;;  %v392_v37 = vld [vmem:[%s1850_s2 + $0x20] sm:$0xff]  ;;  %v394_v39 = vld [vmem:[%s1850_s2 + $0x30] sm:$0xff] }
  0x3d   : > { %576 = vmatpush.msra.mxu0 %v412_v8  ;;  %641 = vmatpush.msra.mxu1 %v413_v10  ;;  %v393_v38 = vld [vmem:[%s1850_s2 + $0x28] sm:$0xff]  ;;  %v395_v40 = vld [vmem:[%s1850_s2 + $0x38] sm:$0xff]  ;;  %v396_v41 = vld [vmem:[%s1850_s2 + $0x40] sm:$0xff] }
  0x3e   : > { %v397_v42 = vld [vmem:[%s1850_s2 + $0x48] sm:$0xff]  ;;  %v398_v43 = vld [vmem:[%s1850_s2 + $0x50] sm:$0xff]  ;;  %v399_v44 = vld [vmem:[%s1850_s2 + $0x58] sm:$0xff] }
  0x3f   : > { %577 = vmatpush.msra.mxu0 %v410_v12  ;;  %642 = vmatpush.msra.mxu1 %v411_v13  ;;  %v400_v45 = vld [vmem:[%s1850_s2 + $0x60] sm:$0xff]  ;;  %v401_v46 = vld [vmem:[%s1850_s2 + $0x68] sm:$0xff]  ;;  %v402_v47 = vld [vmem:[%s1850_s2 + $0x70] sm:$0xff] }
  0x40   : > { %v403_v48 = vld [vmem:[%s1850_s2 + $0x78] sm:$0xff] }
  0x41   : > { %578 = vmatpush.msra.mxu0 %v408_v14  ;;  %643 = vmatpush.msra.mxu1 %v409_v16 }
  0x42   : > { %483 = vperm.xlu0 %1236, %v429_v23  }
  0x43   : > { %579 = vmatpush.msra.mxu0 %v406_v17  ;;  %644 = vmatpush.msra.mxu1 %v407_v19 }
  0x44   : > { %478 = vperm.xlu1 %1237, %v428_v25   ;;  %473 = vperm.xlu2 %1238, %v427_v28  }
  0x45   : > { %580 = vmatpush.msra.mxu0 %v404_v20  ;;  %645 = vmatpush.msra.mxu1 %v405_v21 }
  0x46   : > { %1127 = vmatmul.msk.f32.vlgmr.msra.gmra.mxu0 %vm516_vm0, %v388_v22  ;;  %1143 = vmatmul.msk.f32.vlgmr.msra.gmra.mxu1 %vm516_vm0, %v388_v22 }
  0x4a   : > { %468 = vperm.xlu0 %1236, %v426_v27  }
  0x4c   : > { %463 = vperm.xlu1 %1237, %v425_v29   ;;  %458 = vperm.xlu2 %1238, %v424_v32  }
  0x4e   : > { %1128 = vmatmul.msk.f32.gmra.mxu0 %vm516_vm0, %v389_v26  ;;  %1144 = vmatmul.msk.f32.gmra.mxu1 %vm516_vm0, %v389_v26 }
  0x52   : > { %453 = vperm.xlu0 %1236, %v423_v31  }
  0x54   : > { %448 = vperm.xlu1 %1237, %v422_v33   ;;  %443 = vperm.xlu2 %1238, %v421_v36  }
  0x56   : > { %1129 = vmatmul.msk.f32.gmra.mxu0 %vm516_vm0, %v390_v30  ;;  %1145 = vmatmul.msk.f32.gmra.mxu1 %vm516_vm0, %v390_v30 }
  0x5a   : > { %438 = vperm.xlu0 %1236, %v420_v35  }
  0x5e   : > { %1130 = vmatmul.msk.f32.gmra.mxu0 %vm516_vm0, %v391_v34  ;;  %1146 = vmatmul.msk.f32.gmra.mxu1 %vm516_vm0, %v391_v34 }
  0x66   : > { %1131 = vmatmul.msk.f32.gmra.mxu0 %vm516_vm0, %v392_v37  ;;  %1147 = vmatmul.msk.f32.gmra.mxu1 %vm516_vm0, %v392_v37 }
  0x6e   : > { %1132 = vmatmul.msk.f32.gmra.mxu0 %vm516_vm0, %v393_v38  ;;  %1148 = vmatmul.msk.f32.gmra.mxu1 %vm516_vm0, %v393_v38 }
  0x76   : > { %1133 = vmatmul.msk.f32.gmra.mxu0 %vm516_vm0, %v394_v39  ;;  %1149 = vmatmul.msk.f32.gmra.mxu1 %vm516_vm0, %v394_v39 }
  0x7e   : > { %1134 = vmatmul.msk.f32.gmra.mxu0 %vm516_vm0, %v395_v40  ;;  %1150 = vmatmul.msk.f32.gmra.mxu1 %vm516_vm0, %v395_v40 }
  0x86   : > { %1135 = vmatmul.msk.f32.gmra.mxu0 %vm516_vm0, %v396_v41  ;;  %1151 = vmatmul.msk.f32.gmra.mxu1 %vm516_vm0, %v396_v41 }
  0x8d   : > { %v494_v13 = vpop.permute.xlu2 %493 }
  0x8e   : > { %1136 = vmatmul.msk.f32.gmra.mxu0 %vm516_vm0, %v397_v42  ;;  %1152 = vmatmul.msk.f32.gmra.mxu1 %vm516_vm0, %v397_v42 }
  0x96   : > { %1137 = vmatmul.msk.f32.gmra.mxu0 %vm516_vm0, %v398_v43  ;;  %1153 = vmatmul.msk.f32.gmra.mxu1 %vm516_vm0, %v398_v43  ;;  %v489_v20 = vpop.permute.xlu2 %488 }
  0x9e   : > { %1138 = vmatmul.msk.f32.gmra.mxu0 %vm516_vm0, %v399_v44  ;;  %1154 = vmatmul.msk.f32.gmra.mxu1 %vm516_vm0, %v399_v44  ;;  %v474_v31 = vpop.permute.xlu2 %473 }
  0xa4   : > { %v514_v9 = vpop.permute.xlu0 %513 }
  0xa5   : > { %v504_v12 = vpop.permute.xlu1 %503 }
  0xa6   : > { %1139 = vmatmul.msk.f32.gmra.mxu0 %vm516_vm0, %v400_v45  ;;  %1155 = vmatmul.msk.f32.gmra.mxu1 %vm516_vm0, %v400_v45 }
  0xac   : > { %v509_v16 = vpop.permute.xlu0 %508 }
  0xae   : > { %1140 = vmatmul.msk.f32.gmra.mxu0 %vm516_vm0, %v401_v46  ;;  %1156 = vmatmul.msk.f32.gmra.mxu1 %vm516_vm0, %v401_v46  ;;  %v499_v17 = vpop.permute.xlu1 %498 }
  0xb4   : > { %v484_v21 = vpop.permute.xlu0 %483 }
  0xb6   : > { %1141 = vmatmul.msk.f32.gmra.mxu0 %vm516_vm0, %v402_v47  ;;  %1157 = vmatmul.msk.f32.gmra.mxu1 %vm516_vm0, %v402_v47  ;;  %v479_v26 = vpop.permute.xlu1 %478 }
  0xbc   : > { %v469_v36 = vpop.permute.xlu0 %468 }
  0xbe   : > { %1142 = vmatmul.msk.f32.gmra.mxu0 %vm516_vm0, %v403_v48  ;;  %1158 = vmatmul.msk.f32.gmra.mxu1 %vm516_vm0, %v403_v48 }
  0xc3   : > { %v1684_v49 = vpop.f32.mrf.mxu0  ;;  %v1686_v50 = vpop.f32.mrf.mxu1 }
  0xcb   : > { %v1688_v51 = vpop.f32.mrf.mxu0  ;;  %v1690_v52 = vpop.f32.mrf.mxu1 }
  0xd3   : > { %v1692_v53 = vpop.f32.mrf.mxu0  ;;  %v1694_v54 = vpop.f32.mrf.mxu1 }
  0xdb   : > { %v1696_v55 = vpop.f32.mrf.mxu0  ;;  %v1698_v56 = vpop.f32.mrf.mxu1 }
  0xe3   : > { %v1700_v57 = vpop.f32.mrf.mxu0  ;;  %v1702_v58 = vpop.f32.mrf.mxu1 }
  0xeb   : > { %v1704_v59 = vpop.f32.mrf.mxu0  ;;  %v1706_v60 = vpop.f32.mrf.mxu1 }
  0xf3   : > { %v1708_v61 = vpop.f32.mrf.mxu0  ;;  %v1710_v62 = vpop.f32.mrf.mxu1 }
  0xfb   : > { %v1712_v63 = vpop.f32.mrf.mxu0  ;;  %v1714_v0 = vpop.f32.mrf.mxu1 }
 0x103   : > { %v606_v1 = vpop.f32.mrf.mxu0  ;;  %v671_v2 = vpop.f32.mrf.mxu1 }
 0x10b   : > { %v609_v3 = vpop.f32.mrf.mxu0  ;;  %v674_v4 = vpop.f32.mrf.mxu1 }
 0x10c   : > { %v610_v47 = vadd.f32 %v609_v3, %v484_v21  ;;  %v669_v3 = vadd.f32 %v1714_v0, %v474_v31 }
 0x113   : > { %v612_v5 = vpop.f32.mrf.mxu0  ;;  %v677_v6 = vpop.f32.mrf.mxu1 }
 0x114   : > { %v613_v43 = vadd.f32 %v612_v5, %v489_v20  ;;  %v678_v45 = vadd.f32 %v677_v6, %v489_v20  ;;  %v604_v5 = vadd.f32 %v1712_v63, %v474_v31  ;;  %v454_v6 = vpop.permute.xlu0 %453  ;;  %v710_v20 = vmax.f32 %v669_v3, 0.0 }
 0x11b   : > { %v615_v7 = vpop.f32.mrf.mxu0  ;;  %v680_v8 = vpop.f32.mrf.mxu1 }
 0x11c   : > { %v616_v39 = vadd.f32 %v615_v7, %v494_v13  ;;  %v681_v41 = vadd.f32 %v680_v8, %v494_v13  ;;  %v715_v7 = vmax.f32 %v613_v43, 0.0  ;;  %v672_v8 = vadd.f32 %v671_v2, %v479_v26  ;;  %v733_v43 = vld [vmem:[%s1852_s4 + $0x30] sm:$0xff] }
 0x11d   : > { %v716_v13 = vmax.f32 %v678_v45, 0.0 }
 0x11e   : > { %v717_v48 = vmax.f32 %v616_v39, 0.0  ;;  %v732_v39 = vld [vmem:[%s1852_s4 + $0x28] sm:$0xff] }
 0x123   : > { %v618_v10 = vpop.f32.mrf.mxu0  ;;  %v683_v11 = vpop.f32.mrf.mxu1 }
 0x124   : > { %v619_v34 = vadd.f32 %v618_v10, %v499_v17  ;;  %v684_v37 = vadd.f32 %v683_v11, %v499_v17  ;;  %v675_v10 = vadd.f32 %v674_v4, %v484_v21  ;;  %v718_v11 = vmax.f32 %v681_v41, 0.0 }
 0x125   : > { %v601_v4 = vadd.f32 %v1708_v61, %v469_v36 }
 0x126   : > { %v719_v44 = vmax.f32 %v619_v34, 0.0  ;;  %v720_v46 = vmax.f32 %v684_v37, 0.0  ;;  %v731_v37 = vld [vmem:[%s1852_s4 + $0x20] sm:$0xff] }
 0x127   : > { %v707_v21 = vmax.f32 %v601_v4, 0.0 }
 0x12b   : > { %v621_v14 = vpop.f32.mrf.mxu0  ;;  %v686_v15 = vpop.f32.mrf.mxu1 }
 0x12c   : > { %v622_v29 = vadd.f32 %v621_v14, %v504_v12  ;;  %v687_v32 = vadd.f32 %v686_v15, %v504_v12  ;;  %v607_v12 = vadd.f32 %v606_v1, %v479_v26  ;;  %v459_v14 = vpop.permute.xlu2 %458  ;;  %v713_v15 = vmax.f32 %v610_v47, 0.0 }
 0x12d   : > { %v666_v1 = vadd.f32 %v1710_v62, %v469_v36  ;;  %v595_v0 = vadd.f32 %v1700_v57, %v459_v14  ;;  %v660_v61 = vadd.f32 %v1702_v58, %v459_v14  ;;  %v592_v62 = vadd.f32 %v1696_v55, %v454_v6  ;;  %v439_v57 = vpop.permute.xlu0 %438  ;;  %v730_v36 = vld [vmem:[%s1852_s4 + $0x18] sm:$0xff] }
 0x12e   : > { %v721_v40 = vmax.f32 %v622_v29, 0.0  ;;  %v722_v42 = vmax.f32 %v687_v32, 0.0  ;;  %v711_v17 = vmax.f32 %v607_v12, 0.0 }
 0x12f   : > { %v704_v29 = vmax.f32 %v660_v61, 0.0 }
 0x133   : > { %v624_v18 = vpop.f32.mrf.mxu0  ;;  %v689_v19 = vpop.f32.mrf.mxu1 }
 0x134   : > { %v625_v23 = vadd.f32 %v624_v18, %v509_v16  ;;  %v690_v27 = vadd.f32 %v689_v19, %v509_v16  ;;  %v714_v16 = vmax.f32 %v675_v10, 0.0  ;;  %v712_v18 = vmax.f32 %v672_v8, 0.0  ;;  %v735_v10 = vld [vmem:[%s1852_s4 + $0x40] sm:$0xff] }
 0x135   : > { %v709_v19 = vmax.f32 %v604_v5, 0.0 }
 0x136   : > { %v723_v35 = vmax.f32 %v625_v23, 0.0  ;;  %v724_v38 = vmax.f32 %v690_v27, 0.0  ;;  %v708_v23 = vmax.f32 %v666_v1, 0.0  ;;  %v703_v27 = vmax.f32 %v595_v0, 0.0  ;;  %v980_v0 = vld [vmem:[%s1853_s5] sm:$0xff] }
 0x13b   : > { %v627_v22 = vpop.f32.mrf.mxu0  ;;  %v692_v24 = vpop.f32.mrf.mxu1 }
 0x13c   : > { %v628_v25 = vadd.f32 %v627_v22, %v514_v9  ;;  %v693_v28 = vadd.f32 %v692_v24, %v514_v9  ;;  %v464_v9 = vpop.permute.xlu1 %463 }
 0x13d   : > { %v598_v2 = vadd.f32 %v1704_v59, %v464_v9  ;;  %v663_v63 = vadd.f32 %v1706_v60, %v464_v9  ;;  %v444_v59 = vpop.permute.xlu2 %443  ;;  %v734_v9 = vld [vmem:[%s1852_s4 + $0x38] sm:$0xff] }
 0x13e   : > { %v725_v30 = vmax.f32 %v628_v25, 0.0  ;;  %v726_v33 = vmax.f32 %v693_v28, 0.0  ;;  %v657_v25 = vadd.f32 %v1698_v56, %v454_v6  ;;  %v586_v58 = vadd.f32 %v1688_v51, %v444_v59 }
 0x13f   : > { %v705_v24 = vmax.f32 %v598_v2, 0.0  ;;  %v706_v26 = vmax.f32 %v663_v63, 0.0  ;;  %v651_v55 = vadd.f32 %v1690_v52, %v444_v59  ;;  %v583_v56 = vadd.f32 %v1684_v49, %v439_v57  ;;  %v727_v52 = vld [vmem:[%s1852_s4] sm:$0xff]  ;;  %v728_v49 = vld [vmem:[%s1852_s4 + $0x8] sm:$0xff] }
 0x140   : > { %736 = vmatpush.msra.mxu2 %v725_v30  ;;  %780 = vmatpush.msra.mxu3 %v726_v33  ;;  %v701_v30 = vmax.f32 %v592_v62, 0.0  ;;  %v702_v31 = vmax.f32 %v657_v25, 0.0  ;;  %v697_v34 = vmax.f32 %v586_v58, 0.0  ;;  %v828_v58 = vlaneseq }
 0x141   : > { %v695_v51 = vmax.f32 %v583_v56, 0.0 }
 0x142   : > { %737 = vmatpush.msra.mxu2 %v723_v35  ;;  %781 = vmatpush.msra.mxu3 %v724_v38  ;;  %v1748_v38 = vld [vmem:[%s1523_s6] sm:$0xff]  ;;  %s1384_s6 = smov 111  }
 0x143   : > { %336 = vst [vmem:[#allocation1] ss:$2 sm:$0xff] %v1748_v38 }
 0x144   : > { %738 = vmatpush.msra.mxu2 %v721_v40  ;;  %782 = vmatpush.msra.mxu3 %v722_v42  ;;  %v449_v22 = vpop.permute.xlu1 %448  ;;  %v348_v40 = vmul.f32 %v1748_v38, %v1748_v38 }
 0x145   : > { %v589_v60 = vadd.f32 %v1692_v53, %v449_v22  ;;  %v654_v28 = vadd.f32 %v1694_v54, %v449_v22  ;;  %v648_v53 = vadd.f32 %v1686_v50, %v439_v57  ;;  %v698_v54 = vmax.f32 %v651_v55, 0.0  ;;  %v729_v50 = vld [vmem:[%s1852_s4 + $0x10] sm:$0xff] }
 0x146   : > { %739 = vmatpush.msra.mxu2 %v719_v44  ;;  %783 = vmatpush.msra.mxu3 %v720_v46  ;;  %v1782_v55 = vand.u32 127, %v828_v58 }
 0x147   : > { %v699_v32 = vmax.f32 %v589_v60, 0.0  ;;  %v700_v33 = vmax.f32 %v654_v28, 0.0  ;;  %v696_v35 = vmax.f32 %v648_v53, 0.0 }
 0x148   : > { %740 = vmatpush.msra.mxu2 %v717_v48  ;;  %784 = vmatpush.msra.mxu3 %v718_v11  ;;  %vm847_vm2 = vcmp.lt.s32.totalorder %v1782_v55, 16  ;;  %vm830_vm3 = vcmp.lt.s32.totalorder %v1782_v55, 17  ;;  %vm865_vm4 = vcmp.lt.s32.totalorder %v1782_v55, 15  ;;  %vm883_vm5 = vcmp.lt.s32.totalorder %v1782_v55, 1 }
 0x149   : > { %vm912_vm6 = vcmp.lt.s32.totalorder %v1782_v55, 127  ;;  %vm930_vm7 = vcmp.lt.s32.totalorder %v1782_v55, 113  ;;  %vm948_vm8 = vcmp.lt.s32.totalorder %v1782_v55, 112  ;;  %vm966_vm11 = vcmp.lt.s32.totalorder %v1782_v55, 111 }
 0x14a   : > { %741 = vmatpush.msra.mxu2 %v715_v7  ;;  %785 = vmatpush.msra.mxu3 %v716_v13  ;;  %v337_v41 = vld.sshfl [vmem:[#allocation1] sm:$0xff pattern:$0x75316420]  ;;  %v338_v42 = vld.sshfl [vmem:[#allocation1 + $0x8] sm:$0xff pattern:$0x75316420] }
 0x14b   : > { %350 = vst [vmem:[#allocation1] ss:$2 sm:$0xff] %v348_v40  ;;  %v342_v11 = vsel %vm341_vm1, %v337_v41, 0.0  ;;  %v343_v12 = vsel %vm341_vm1, %v338_v42, 0.0 }
 0x14c   : > { %742 = vmatpush.msra.mxu2 %v713_v15  ;;  %786 = vmatpush.msra.mxu3 %v714_v16  ;;  %v344_v7 = vadd.f32 %v343_v12, %v342_v11  ;;  %v898_v12 = vld [vmem:[#allocation5 + $0x8] sm:$0x3] }
 0x14e   : > { %743 = vmatpush.msra.mxu2 %v711_v17  ;;  %787 = vmatpush.msra.mxu3 %v712_v18 }
 0x14f   : > { %345 = vadd.xlane.f32.xlu1 %v344_v7 }
 0x150   : > { %744 = vmatpush.msra.mxu2 %v709_v19  ;;  %788 = vmatpush.msra.mxu3 %v710_v20 }
 0x152   : > { %745 = vmatpush.msra.mxu2 %v707_v21  ;;  %789 = vmatpush.msra.mxu3 %v708_v23  ;;  %v351_v44 = vld.sshfl [vmem:[#allocation1] sm:$0xff pattern:$0x75316420]  ;;  %v352_v45 = vld.sshfl [vmem:[#allocation1 + $0x8] sm:$0xff pattern:$0x75316420] }
 0x153   : > { %v355_v46 = vsel %vm341_vm1, %v351_v44, 0.0  ;;  %v356_v47 = vsel %vm341_vm1, %v352_v45, 0.0 }
 0x154   : > { %746 = vmatpush.msra.mxu2 %v705_v24  ;;  %790 = vmatpush.msra.mxu3 %v706_v26  ;;  %v357_v48 = vadd.f32 %v356_v47, %v355_v46 }
 0x156   : > { %747 = vmatpush.msra.mxu2 %v703_v27  ;;  %791 = vmatpush.msra.mxu3 %v704_v29 }
 0x157   : > { %358 = vadd.xlane.f32.xlu2 %v357_v48 }
 0x158   : > { %748 = vmatpush.msra.mxu2 %v701_v30  ;;  %792 = vmatpush.msra.mxu3 %v702_v31  ;;  %v851_v31 = vld [vmem:[#allocation5 + $0x2] sm:$0x3] }
 0x15a   : > { %749 = vmatpush.msra.mxu2 %v699_v32  ;;  %793 = vmatpush.msra.mxu3 %v700_v33  ;;  %v833_v32 = vld [vmem:[#allocation5] sm:$0x3]  ;;  %v869_v33 = vld [vmem:[#allocation5 + $0x4] sm:$0x3] }
 0x15c   : > { %750 = vmatpush.msra.mxu2 %v697_v34  ;;  %794 = vmatpush.msra.mxu3 %v698_v54  ;;  %v853_v34 = vperm.slane %v851_v31, 0  ;;  %v854_v54 = vperm.slane %v851_v31, 1 }
 0x15e   : > { %751 = vmatpush.msra.mxu2 %v695_v51  ;;  %795 = vmatpush.msra.mxu3 %v696_v35  ;;  %v835_v51 = vperm.slane %v833_v32, 0 }
 0x15f   : > { %752 = vmatmul.f32.vlgmr.msra.gmra.mxu2 %v727_v52  ;;  %796 = vmatmul.f32.vlgmr.msra.gmra.mxu3 %v727_v52 }
 0x167   : > { %755 = vmatmul.f32.gmra.mxu2 %v728_v49  ;;  %799 = vmatmul.f32.gmra.mxu3 %v728_v49  ;;  %v887_v49 = vld [vmem:[#allocation5 + $0x6] sm:$0x3] }
 0x168   : > { %v889_v47 = vperm.slane %v887_v49, 0  ;;  %v890_v48 = vperm.slane %v887_v49, 1 }
 0x16f   : > { %758 = vmatmul.f32.gmra.mxu2 %v729_v50  ;;  %802 = vmatmul.f32.gmra.mxu3 %v729_v50 }
 0x177   : > { %761 = vmatmul.f32.gmra.mxu2 %v730_v36  ;;  %805 = vmatmul.f32.gmra.mxu3 %v730_v36  ;;  %v836_v36 = vperm.slane %v833_v32, 1 }
 0x17f   : > { %764 = vmatmul.f32.gmra.mxu2 %v731_v37  ;;  %808 = vmatmul.f32.gmra.mxu3 %v731_v37  ;;  %v871_v37 = vperm.slane %v869_v33, 0 }
 0x187   : > { %767 = vmatmul.f32.gmra.mxu2 %v732_v39  ;;  %811 = vmatmul.f32.gmra.mxu3 %v732_v39  ;;  %v872_v39 = vperm.slane %v869_v33, 1 }
 0x18f   : > { %770 = vmatmul.f32.gmra.mxu2 %v733_v43  ;;  %814 = vmatmul.f32.gmra.mxu3 %v733_v43 }
 0x197   : > { %773 = vmatmul.f32.gmra.mxu2 %v734_v9  ;;  %817 = vmatmul.f32.gmra.mxu3 %v734_v9 }
 0x19f   : > { %776 = vmatmul.f32.gmra.mxu2 %v735_v10  ;;  %820 = vmatmul.f32.gmra.mxu3 %v735_v10 }
 0x1c2   : > { %v346_v59 = vpop.xlane.xlu1 %345 }
 0x1c3   : > { %v1776_v25 = vmul.f32 0.00390625, %v346_v59  ;;  %v934_v59 = vld [vmem:[#allocation5 + $0xc] sm:$0x3] }
 0x1c4   : > { %v937_v33 = vperm.slane %v934_v59, 1 }
 0x1c5   : > { %v361_v57 = vmul.f32 %v1776_v25, %v1776_v25 }
 0x1ca   : > { %v359_v60 = vpop.xlane.xlu2 %358 }
 0x1cb   : > { %v360_v27 = vmul.f32 0.00390625, %v359_v60 }
 0x1cd   : > { %v362_v28 = vsub.f32 %v360_v27, %v361_v57 }
 0x1cf   : > { %v1780_v30 = vadd.f32 1e-05, %v362_v28  ;;  %v952_v28 = vld [vmem:[#allocation5 + $0xe] sm:$0x3] }
 0x1d1   : > { %1239 = vrsqrt.f32 %v1780_v30  ;;  %vm377_vm9 = vweird.f32 %v1780_v30 }
 0x1d7   : > { %v1788_v50 = vpop.eup %1239 }
 0x1d8   : > { %v372_v9 = vmul.f32 %v1788_v50, %v1780_v30  ;;  %vm378_vm10 = vweird.f32 %v1788_v50 }
 0x1d9   : > { %vm379_vm12 = vmor %vm377_vm9, %vm378_vm10 }
 0x1e2   : > { %v753_v14 = vpop.f32.mrf.mxu2  ;;  %v797_v8 = vpop.f32.mrf.mxu3 }
 0x1e3   : > { %824 = vrot.lane.b32.xlu0 %v753_v14, %s1377_s13 }
 0x1ea   : > { %v756_v13 = vpop.f32.mrf.mxu2  ;;  %v800_v5 = vpop.f32.mrf.mxu3 }
 0x1eb   : > { %826 = vrot.lane.b32.xlu0 %v797_v8, %s1377_s13  ;;  %s1017_s13 = scalar_lea.hbm %s1855_s7, %s1166_s28 }
 0x1f2   : > { %v759_v15 = vpop.f32.mrf.mxu2  ;;  %v803_v6 = vpop.f32.mrf.mxu3 }
 0x1f3   : > { %843 = vrot.lane.b32.xlu0 %v756_v13, %s1378_s14  ;;  %863 = vrot.lane.b32.xlu2 %v803_v6, %s1379_s16  ;;  %v916_v6 = vld [vmem:[#allocation5 + $0xa] sm:$0x3] }
 0x1fa   : > { %v762_v3 = vpop.f32.mrf.mxu2  ;;  %v806_v16 = vpop.f32.mrf.mxu3 }
 0x1fb   : > { %845 = vrot.lane.b32.xlu0 %v800_v5, %s1378_s14  ;;  %879 = vrot.lane.b32.xlu1 %v762_v3, %s1380_s17  ;;  %s328_s14 = scalar_lea.vmem [#allocation7], %s1122_s12 }
 0x202   : > { %v1769_v4 = vpop.f32.mrf.mxu2  ;;  %v1771_v17 = vpop.f32.mrf.mxu3 }
 0x203   : > { %861 = vrot.lane.b32.xlu0 %v759_v15, %s1379_s16  ;;  %s1019_s16 = sshll.u32 %s328_s14, 4  ;;  %s1020_s16 = int_to_ptr.vmem [resolvable:$true] %s1019_s16 }
 0x20a   : > { %v768_v1 = vpop.f32.mrf.mxu2  ;;  %v812_v18 = vpop.f32.mrf.mxu3 }
 0x20b   : > { %881 = vrot.lane.b32.xlu0 %v806_v16, %s1380_s17  ;;  %s1021_s17 = sshll.u32 %s1017_s13, 4  ;;  %s1022_s17 = int_to_ptr.hbm [resolvable:$true] %s1021_s17 }
 0x212   : > { %v771_v2 = vpop.f32.mrf.mxu2  ;;  %v815_v19 = vpop.f32.mrf.mxu3 }
 0x213   : > { %908 = vrot.lane.b32.xlu0 %v768_v1, %s1381_s29  ;;  %926 = vrot.lane.b32.xlu2 %v771_v2, %s1382_s23  ;;  %v900_v2 = vperm.slane %v898_v12, 0 }
 0x214   : > { %928 = vrot.lane.b32.xlu1 %v815_v19, %s1382_s23  ;;  %v901_v19 = vperm.slane %v898_v12, 1 }
 0x215   : > { %v904_v60 = vmul.f32 %v900_v2, %v1769_v4  ;;  %v955_v4 = vperm.slane %v952_v28, 1 }
 0x216   : > { %v905_v27 = vmul.f32 %v901_v19, %v1771_v17 }
 0x21a   : > { %v774_v63 = vpop.f32.mrf.mxu2  ;;  %v818_v20 = vpop.f32.mrf.mxu3 }
 0x21b   : > { %910 = vrot.lane.b32.xlu0 %v812_v18, %s1381_s29  ;;  %946 = vrot.lane.b32.xlu2 %v818_v20, %s1383_s30  ;;  %s1315_s29 = sshra.s32 %s1022_s17, 4  ;;  %s1316_s29 = int_to_ptr.hbm [resolvable:$true] %s1315_s29 }
 0x21c   : > { %s1317_s23 = scalar_lea.hbm %s1316_s29, 8  ;;  %p1322_p8 = scmp.lt.s32.totalorder %s1316_s29, %s1855_s7 }
 0x21d   : > { %p1318_p1 = scmp.ne.s32.totalorder %s1316_s29, %s1317_s23  ;;  %p1323_p7 = scmp.lt.s32.totalorder %s1321_s10, %s1317_s23 }
 0x21f   : > { %p1319_p5 = pnand %p1318_p1, %p1486_p13  ;;  %p1324_p9 = por %p1323_p7, %p1322_p8 }
 0x221   : > { %p1320_p12 = pneg %p1319_p5 }
 0x222   : > { %v777_v21 = vpop.f32.mrf.mxu2  ;;  %v821_v22 = vpop.f32.mrf.mxu3 }
 0x223   : > { %944 = vrot.lane.b32.xlu0 %v774_v63, %s1383_s30  ;;  %962 = vrot.lane.b32.xlu1 %v777_v21, %s1384_s6  ;;  %v373_v63 = vmul.f32 %v1788_v50, %v372_v9  ;;  %v918_v21 = vperm.slane %v916_v6, 0  ;;  %p1325_p10 = pnand %p1324_p9, %p1320_p12 }
 0x224   : > { %983 = vperm.xlu2 %1238, %v980_v0  }
 0x225   : > { %v374_v57 = vmul.f32 0.5, %v373_v63 }
 0x22b   : > { %964 = vrot.lane.b32.xlu0 %v821_v22, %s1384_s6  ;;  %v919_v22 = vperm.slane %v916_v6, 1 }
 0x24d   : > { %v864_v56 = vpop.permute.xlu2 %863 }
 0x255   : > { %v825_v61 = vpop.permute.xlu0 %824 }
 0x25d   : > { %v827_v23 = vpop.permute.xlu0 %826 }
 0x25e   : > { %v831_v40 = vsel %vm830_vm3, %v825_v61, %v827_v23  ;;  %v832_v41 = vsel %vm830_vm3, %v827_v23, %v825_v61 }
 0x25f   : > { %v839_v7 = vmul.f32 %v835_v51, %v832_v41  ;;  %v840_v14 = vmul.f32 %v836_v36, %v831_v40 }
 0x265   : > { %v844_v62 = vpop.permute.xlu0 %843 }
 0x26d   : > { %v846_v24 = vpop.permute.xlu0 %845  ;;  %v880_v46 = vpop.permute.xlu1 %879 }
 0x26e   : > { %v848_v52 = vsel %vm847_vm2, %v844_v62, %v846_v24  ;;  %v849_v35 = vsel %vm847_vm2, %v846_v24, %v844_v62  ;;  %v927_v8 = vpop.permute.xlu2 %926 }
 0x26f   : > { %v857_v44 = vmul.f32 %v853_v34, %v849_v35  ;;  %v858_v45 = vmul.f32 %v854_v54, %v848_v52  ;;  %v954_v52 = vperm.slane %v952_v28, 0  ;;  %v970_v35 = vld [vmem:[#allocation5 + $0x10] sm:$0x3] }
 0x271   : > { %v859_v3 = vadd.f32 %v857_v44, %v839_v7  ;;  %v860_v16 = vadd.f32 %v858_v45, %v840_v14 }
 0x275   : > { %v862_v26 = vpop.permute.xlu0 %861 }
 0x276   : > { %v866_v42 = vsel %vm865_vm4, %v862_v26, %v864_v56  ;;  %v867_v43 = vsel %vm865_vm4, %v864_v56, %v862_v26  ;;  %v1385_v56 = vmov 839922192   ;;  %v947_v34 = vpop.permute.xlu2 %946 }
 0x277   : > { %v875_v13 = vmul.f32 %v871_v37, %v867_v43  ;;  %v876_v5 = vmul.f32 %v872_v39, %v866_v42  ;;  %v365_v32 = vunpack.c.l.s4 %v1385_v56  ;;  %v375_v39 = vsub.f32 1.5, %v374_v57 }
 0x278   : > { %v972_v42 = vperm.slane %v970_v35, 0  ;;  %v973_v43 = vperm.slane %v970_v35, 1 }
 0x279   : > { %v877_v20 = vadd.f32 %v875_v13, %v859_v3  ;;  %v878_v0 = vadd.f32 %v876_v5, %v860_v16  ;;  %v366_v9 = vunpack.c.0.s8 %v365_v32 }
 0x27b   : > { %v367_v6 = vperm.slane %v1776_v25, %v366_v9 }
 0x27d   : > { %v882_v29 = vpop.permute.xlu0 %881  ;;  %v369_v30 = vsub.f32 %v1748_v38, %v367_v6 }
 0x27e   : > { %v884_v10 = vsel %vm883_vm5, %v880_v46, %v882_v29  ;;  %v885_v11 = vsel %vm883_vm5, %v882_v29, %v880_v46 }
 0x27f   : > { %v893_v1 = vmul.f32 %v889_v47, %v885_v11  ;;  %v894_v18 = vmul.f32 %v890_v48, %v884_v10  ;;  %v376_v10 = vmul.f32 %v1788_v50, %v375_v39 }
 0x281   : > { %v895_v62 = vadd.f32 %v893_v1, %v877_v20  ;;  %v896_v24 = vadd.f32 %v894_v18, %v878_v0  ;;  %v380_v3 = vsel %vm379_vm12, %v1788_v50, %v376_v10  ;;  %v984_v18 = vpop.permute.xlu2 %983 }
 0x282   : > { %v385_v63 = vperm.slane %v380_v3, %v366_v9 }
 0x283   : > { %v906_v54 = vadd.f32 %v904_v60, %v895_v62  ;;  %v907_v51 = vadd.f32 %v905_v27, %v896_v24 }
 0x285   : > { %v909_v53 = vpop.permute.xlu0 %908 }
 0x286   : > { %v929_v26 = vpop.permute.xlu1 %928 }
 0x287   : > { %v931_v17 = vsel %vm930_vm7, %v927_v8, %v929_v26  ;;  %v932_v49 = vsel %vm930_vm7, %v929_v26, %v927_v8 }
 0x288   : > { %v941_v45 = vmul.f32 %v937_v33, %v932_v49 }
 0x28d   : > { %v911_v15 = vpop.permute.xlu0 %910 }
 0x28e   : > { %v913_v61 = vsel %vm912_vm6, %v909_v53, %v911_v15  ;;  %v914_v23 = vsel %vm912_vm6, %v911_v15, %v909_v53  ;;  %v936_v53 = vperm.slane %v934_v59, 0 }
 0x28f   : > { %v922_v29 = vmul.f32 %v918_v21, %v913_v61  ;;  %v923_v58 = vmul.f32 %v919_v22, %v914_v23  ;;  %v387_v22 = vmul.f32 %v385_v63, %v369_v30 }
 0x290   : > { %v940_v44 = vmul.f32 %v936_v53, %v931_v17 }
 0x291   : > { %v924_v40 = vadd.f32 %v922_v29, %v906_v54  ;;  %v925_v41 = vadd.f32 %v923_v58, %v907_v51 }
 0x293   : > { %v942_v11 = vadd.f32 %v940_v44, %v924_v40  ;;  %v943_v12 = vadd.f32 %v941_v45, %v925_v41 }
 0x295   : > { %v945_v31 = vpop.permute.xlu0 %944  ;;  %v963_v48 = vpop.permute.xlu1 %962 }
 0x296   : > { %v949_v36 = vsel %vm948_vm8, %v945_v31, %v947_v34  ;;  %v950_v37 = vsel %vm948_vm8, %v947_v34, %v945_v31 }
 0x297   : > { %v958_v46 = vmul.f32 %v954_v52, %v949_v36  ;;  %v959_v47 = vmul.f32 %v955_v4, %v950_v37 }
 0x299   : > { %v960_v55 = vadd.f32 %v958_v46, %v942_v11  ;;  %v961_v13 = vadd.f32 %v959_v47, %v943_v12 }
 0x29d   : > { %v965_v7 = vpop.permute.xlu0 %964 }
 0x29e   : > { %v967_v14 = vsel %vm966_vm11, %v963_v48, %v965_v7  ;;  %v968_v8 = vsel %vm966_vm11, %v965_v7, %v963_v48 }
 0x29f   : > { %v976_v5 = vmul.f32 %v972_v42, %v967_v14  ;;  %v977_v15 = vmul.f32 %v973_v43, %v968_v8 }
 0x2a1   : > { %v978_v16 = vadd.f32 %v976_v5, %v960_v55  ;;  %v979_v1 = vadd.f32 %v977_v15, %v961_v13 }
 0x2a3   : > { %v986_v2 = vadd.f32 %v984_v18, %v978_v16  ;;  %v987_v19 = vadd.f32 %v984_v18, %v979_v1 }
 0x2a5   : > { %v989_v20 = vadd.f32 1.0, %v987_v19  ;;  %998 = vst.sshfl [vmem:[#allocation1] sm:$0xff pattern:$0x75316420] %v986_v2  ;;  %v988_v0 = vadd.f32 1.0, %v986_v2 }
 0x2a6   : > { %999 = vst.sshfl [vmem:[#allocation1 + $0x8] sm:$0xff pattern:$0x75316420] %v987_v19 }
 0x2a7   : > { %v992_v21 = vrot.slane %v989_v20, 4 }
 0x2a9   : > { %v993_v25 = vsel %vm341_vm1, %v988_v0, %v992_v21 }
 0x2aa   : > { %v995_v50 = vmul.f32 %v993_v25, %v387_v22 }
 0x2ad   : > { %v1001_v38 = vld [vmem:[#allocation1 + $0x1] ss:$2 sm:$0xff] }
 0x2ae   : > { %v1003_v61 = vadd.f32 %v1001_v38, %v995_v50 }
 0x2b0   : > { %1004 = vst [vmem:[%s328_s14] sm:$0xff] %v1003_v61 }
 0x2b1   : > { %1328 = shalt.err (!%p1325_p10)
}
 0x2b2   : > { %1173 = dma.vmem_to_hbm [thread:$0]  (%p1486_p13), %s1020_s16, 128, %s1022_s17, %s1006_s8  }
 0x2b3 PF: > { %s1033_s21 = sand.u32 1, %s1359_s24   ;;  %p1863_p11 = scmp.ge.s32.totalorder %s1371_s27, 2 }
 0x2b4   : > { %s1034_s28 = scalar_lea.sflag [#allocation4], %s1033_s21 }
 0x2b5   : > { %p1184_p0 = pnand %p1863_p11, %p1491_p4 }
 0x2b7   : > { %p1185_p2 = pneg %p1184_p0 }
 0x2b9   : > { %1354 = dma.done.wait (%p1185_p2), %s1034_s28, 128  }
 0x2ba   : > { %1356 = vsyncadd (%p1185_p2), %s1034_s28, 4294967168  ;;  %p21_p6 = scmp.ge.s32.totalorder %s1466_s15, 4   ;;  %s1864_s24 = smov %s1363_s25 }
 0x2bb   : > { %s1865_s25 = smov %s1367_s26  ;;  %s1866_s26 = smov %s1478_s18 }
 0x2bc   : > { %s1867_s27 = smov %s1466_s15  ;;  %23 = sbr.rel (!%p21_p6) target bundleno = 8 (0x8), region = 109 }
 0x2c1   :  { %1040 = vsyncpa [#allocation3], 1 }
 0x2c2   :  { %1042 = vsyncpa [#allocation3 + $0x1], 1 }
 0x2c3   :  { %1043 = vsyncpa [#allocation6], 1 }
 0x2c4   :  { %1044 = vsyncpa [#allocation4], 1 }
 0x2c5   :  { %1046 = vsyncpa [#allocation4 + $0x1], 1 }

</bundles_post_ra>
